<compile_context>
chip_gen: v5e
topology: v5e:2x2
jax: 0.10.0
libtpu: 0.0.40
codegen_flags: <defaults>
</compile_context>

<pallas_src>
import functools

import numpy as np
import jax
import jax.numpy as jnp
from jax import lax
from jax.experimental import pallas as pl
from jax.experimental.pallas import tpu as pltpu


# ----------------------------------------------------------------------------
# Pallas kernel: one S-chunk of the fused bidirectional LSTM + Linear head.
#   xf_ref  : (TS*BP, E)  bf16  forward-direction embeddings of this chunk
#   xb_ref  : (TS*BP, E)  bf16  backward-direction chunk (natural time order)
#   wihf_ref: (E, 8H)     bf16  fwd input proj, cols [i|f|o|g], bwd halves = 0
#   wihb_ref: (E, 8H)     bf16  bwd input proj, fwd halves = 0
#   whh_ref : (2H, 8H)    bf16  block-diag hidden proj for [h_f | h_b] rows
#   b_ref   : (1, 8H)     f32   combined (ih+hh) biases, same column layout
#   fcw_ref : (2H, OUTP)  bf16  fc weight^T, lane-padded
#   fcb_ref : (1, OUTP)   f32
#   out_ref : (BP, OUTP)  f32   fc(cat(h_fwd_last, h_bwd_last))
#   cell_ref: (BP, CELLP) f32   [c_fwd_last | c_bwd_last | zero pad]
#   h_ref/c_ref : (BP, 2H) f32  persistent recurrent state across chunks
#   gxf/gxb : (TS*BP, 8H) bf16  per-chunk input projections (scratch)
# ----------------------------------------------------------------------------
def bilstm_kernel(xf_ref, xb_ref, wihf_ref, wihb_ref, whh_ref, b_ref,
                  fcw_ref, fcb_ref, out_ref, cell_ref,
                  h_ref, c_ref, gxf_ref, gxb_ref, *, TS, BP, H, CELLP):
    H2 = 2 * H
    ck = pl.program_id(0)

    @pl.when(ck == 0)
    def _():
        h_ref[...] = jnp.zeros_like(h_ref)
        c_ref[...] = jnp.zeros_like(c_ref)

    # Per-chunk input projections for both directions: two MXU dots, results
    # stored in bf16 VMEM scratch so the serial loop only does the hidden
    # matmul + gate math per step.
    gxf_ref[...] = jnp.dot(xf_ref[...], wihf_ref[...],
                           preferred_element_type=jnp.float32
                           ).astype(jnp.bfloat16)
    gxb_ref[...] = jnp.dot(xb_ref[...], wihb_ref[...],
                           preferred_element_type=jnp.float32
                           ).astype(jnp.bfloat16)

    whh = whh_ref[...]          # (2H, 8H) bf16, resident across steps
    bias = b_ref[...]           # (1, 8H)  f32

    def step(t, carry):
        h, c = carry            # (BP, 2H) f32, layout [fwd | bwd]
        rf = pl.multiple_of(t * BP, BP)                 # fwd rows (time order)
        rb = pl.multiple_of((TS - 1 - t) * BP, BP)      # bwd rows (reversed)
        pre = (gxf_ref[pl.ds(rf, BP), :].astype(jnp.float32)
               + gxb_ref[pl.ds(rb, BP), :].astype(jnp.float32)
               + bias
               + jnp.dot(h.astype(jnp.bfloat16), whh,
                         preferred_element_type=jnp.float32))
        # Columns [i | f | o | g], each 2H = [fwd | bwd], aligned with h/c.
        # Sigmoid-gate columns were pre-scaled by 0.5 in the wrapper, so a
        # single tanh over all 8H lanes yields every gate activation.
        th = jnp.tanh(pre)
        sg = 0.5 * (th[:, :3 * H2] + 1.0)
        i = sg[:, 0 * H2:1 * H2]
        f = sg[:, 1 * H2:2 * H2]
        o = sg[:, 2 * H2:3 * H2]
        g = th[:, 3 * H2:4 * H2]
        c = f * c + i * g
        h = o * jnp.tanh(c)
        return h, c

    h, c = lax.fori_loop(0, TS, step, (h_ref[...], c_ref[...]),
                         unroll=min(TS, 8))
    h_ref[...] = h
    c_ref[...] = c

    @pl.when(ck == pl.num_programs(0) - 1)
    def _():
        # fc(cat([h_fwd, h_bwd])): h already has that layout -> one dot,
        # lane-dense (BP, OUTP) store.  Cell is lane-padded to CELLP.
        out_ref[...] = (jnp.dot(h.astype(jnp.bfloat16), fcw_ref[...],
                                preferred_element_type=jnp.float32)
                        + fcb_ref[...])
        pad = CELLP - H2
        cell = c if pad == 0 else jnp.concatenate(
            [c, jnp.zeros((c.shape[0], pad), jnp.float32)], axis=1)
        cell_ref[...] = cell


# ----------------------------------------------------------------------------
# Wrapper: embedding gather, permute, padding, gate packing, pallas_call.
# ----------------------------------------------------------------------------
def bilstm_tagger_forward(ids, p, *, chunk_steps=None):
    B, S = ids.shape
    E = p["embedding"].shape[1]
    H = p["whh_f"].shape[1]
    OUT = p["fcw"].shape[0]
    BP = 8                                   # pad batch to full sublane width
    H2, G8 = 2 * H, 8 * H
    OUTP = pl.cdiv(OUT, 128) * 128           # lane-dense fc output
    CELLP = pl.cdiv(H2, 128) * 128           # lane-dense cell output

    # Timesteps per grid chunk: largest divisor of S <= chunk_steps (must
    # divide S exactly -- zero-padding timesteps would change the recurrence).
    cap = 32 if chunk_steps is None else chunk_steps
    TS = next(ts for ts in range(min(S, cap), 0, -1) if S % ts == 0)
    NC = S // TS
    CB = TS * BP

    # embedding + dropout(eval=identity) + permute(1, 0, 2) -> (S, B, E)
    emb = jnp.take(p["embedding"], ids, axis=0)                  # (B, S, E)
    emb = jnp.transpose(emb, (1, 0, 2)).astype(jnp.float32)      # (S, B, E)
    emb_p = jnp.zeros((S, BP, E), jnp.float32).at[:, :B, :].set(emb)
    x2d = emb_p.reshape(S * BP, E).astype(jnp.bfloat16)          # passed twice

    # Gate packing: kernel column order [i | f | o | g] (params are [i,f,g,o]),
    # direction-minor inside each gate; sigmoid-gate columns (i,f,o) are
    # pre-scaled by 0.5 so the kernel needs only one tanh per step.
    GATES = (0, 1, 3, 2)
    SCALE = (0.5, 0.5, 0.5, 1.0)

    def spread_ih(w, half):                  # (4H, K) -> (K, 8H), other half 0
        out = jnp.zeros((w.shape[1], G8), jnp.float32)
        for pos, (q, s) in enumerate(zip(GATES, SCALE)):
            c0 = pos * H2 + half * H
            out = out.at[:, c0:c0 + H].set(w[q * H:(q + 1) * H, :].T * s)
        return out

    def pack_whh(wf, wb):                    # -> (2H, 8H) block-diagonal
        out = jnp.zeros((H2, G8), jnp.float32)
        for pos, (q, s) in enumerate(zip(GATES, SCALE)):
            out = out.at[:H, pos * H2:pos * H2 + H].set(
                wf[q * H:(q + 1) * H, :].T * s)
            out = out.at[H:, pos * H2 + H:(pos + 1) * H2].set(
                wb[q * H:(q + 1) * H, :].T * s)
        return out

    def pack_bias(bf, bb):                   # -> (1, 8H)
        parts = []
        for q, s in zip(GATES, SCALE):
            parts.append(bf[q * H:(q + 1) * H] * s)
            parts.append(bb[q * H:(q + 1) * H] * s)
        return jnp.concatenate(parts).reshape(1, G8)

    wihf = spread_ih(p["wih_f"], 0).astype(jnp.bfloat16)            # (E, 8H)
    wihb = spread_ih(p["wih_b"], 1).astype(jnp.bfloat16)            # (E, 8H)
    whh = pack_whh(p["whh_f"], p["whh_b"]).astype(jnp.bfloat16)     # (2H, 8H)
    bias = pack_bias(p["bih_f"] + p["bhh_f"],
                     p["bih_b"] + p["bhh_b"]).astype(jnp.float32)   # (1, 8H)

    fcw = jnp.zeros((H2, OUTP), jnp.float32).at[:, :OUT].set(p["fcw"].T)
    fcw = fcw.astype(jnp.bfloat16)
    fcb = jnp.zeros((1, OUTP), jnp.float32).at[:, :OUT].set(p["fcb"])

    kern = functools.partial(bilstm_kernel, TS=TS, BP=BP, H=H, CELLP=CELLP)

    out_p, cell_p = pl.pallas_call(
        kern,
        grid=(NC,),
        out_shape=(jax.ShapeDtypeStruct((BP, OUTP), jnp.float32),
                   jax.ShapeDtypeStruct((BP, CELLP), jnp.float32)),
        in_specs=[
            pl.BlockSpec((CB, E), lambda c: (c, 0)),             # fwd chunk
            pl.BlockSpec((CB, E), lambda c: (NC - 1 - c, 0)),    # bwd chunk
            pl.BlockSpec((E, G8), lambda c: (0, 0)),             # wihf
            pl.BlockSpec((E, G8), lambda c: (0, 0)),             # wihb
            pl.BlockSpec((H2, G8), lambda c: (0, 0)),            # whh
            pl.BlockSpec((1, G8), lambda c: (0, 0)),             # bias
            pl.BlockSpec((H2, OUTP), lambda c: (0, 0)),          # fcw
            pl.BlockSpec((1, OUTP), lambda c: (0, 0)),           # fcb
        ],
        out_specs=(pl.BlockSpec((BP, OUTP), lambda c: (0, 0)),
                   pl.BlockSpec((BP, CELLP), lambda c: (0, 0))),
        scratch_shapes=[
            pltpu.VMEM((BP, H2), jnp.float32),       # h carry
            pltpu.VMEM((BP, H2), jnp.float32),       # c carry
            pltpu.VMEM((CB, G8), jnp.bfloat16),      # gx fwd (chunk)
            pltpu.VMEM((CB, G8), jnp.bfloat16),      # gx bwd (chunk)
        ],
        compiler_params=pltpu.CompilerParams(
            dimension_semantics=("arbitrary",),
            vmem_limit_bytes=32 * 1024 * 1024),
    )(x2d, x2d, wihf, wihb, whh, bias, fcw, fcb)

    out = out_p[:B, :OUT]
    cell = jnp.stack([cell_p[:B, :H], cell_p[:B, H:H2]], axis=0)   # (2, B, H)
    return out, cell


# ----------------------------------------------------------------------------
# Pure-JAX f32 reference (mirrors torch semantics) for a sanity check
# ----------------------------------------------------------------------------
def reference_forward(ids, p):
    emb = jnp.take(p["embedding"], ids, axis=0)
    emb = jnp.transpose(emb, (1, 0, 2)).astype(jnp.float32)
    S, B, E = emb.shape
    H = p["whh_f"].shape[1]

    def run_lstm(x_seq, wih, whh, bih, bhh):
        def step(carry, x):
            h, c = carry
            pre = x @ wih.T + h @ whh.T + bih + bhh
            i = jax.nn.sigmoid(pre[:, :H])
            f = jax.nn.sigmoid(pre[:, H:2 * H])
            g = jnp.tanh(pre[:, 2 * H:3 * H])
            o = jax.nn.sigmoid(pre[:, 3 * H:])
            c = f * c + i * g
            h = o * jnp.tanh(c)
            return (h, c), h
        (h, c), _ = lax.scan(step, (jnp.zeros((B, H)), jnp.zeros((B, H))), x_seq)
        return h, c

    hf, cf = run_lstm(emb, p["wih_f"], p["whh_f"], p["bih_f"], p["bhh_f"])
    hb, cb = run_lstm(emb[::-1], p["wih_b"], p["whh_b"], p["bih_b"], p["bhh_b"])
    hcat = jnp.concatenate([hf, hb], axis=1)
    out = hcat @ p["fcw"].T + p["fcb"]
    cell = jnp.stack([cf, cb], axis=0)
    return out, cell


def init_params(key, vocab_size, embedding_dim, hidden_dim, out_dim=50):
    ks = jax.random.split(key, 11)
    k = 1.0 / np.sqrt(hidden_dim)
    kf = 1.0 / np.sqrt(2 * hidden_dim)
    u = lambda kk, shape, b: jax.random.uniform(kk, shape, jnp.float32, -b, b)
    H, E = hidden_dim, embedding_dim
    return dict(
        embedding=jax.random.normal(ks[0], (vocab_size, E), jnp.float32),
        wih_f=u(ks[1], (4 * H, E), k), whh_f=u(ks[2], (4 * H, H), k),
        bih_f=u(ks[3], (4 * H,), k), bhh_f=u(ks[4], (4 * H,), k),
        wih_b=u(ks[5], (4 * H, E), k), whh_b=u(ks[6], (4 * H, H), k),
        bih_b=u(ks[7], (4 * H,), k), bhh_b=u(ks[8], (4 * H,), k),
        fcw=u(ks[9], (out_dim, 2 * H), kf),
        fcb=u(ks[10], (out_dim,), kf),
    )


if __name__ == "__main__":
    VOCAB, EMB_DIM, HIDDEN = 40, 16, 32
    BATCH, SEQ = 2, 8

    root = jax.random.PRNGKey(0)
    k_param, k_ids = jax.random.split(root)
    params = init_params(k_param, VOCAB, EMB_DIM, HIDDEN)
    ids = jax.random.randint(k_ids, (BATCH, SEQ), 0, VOCAB, dtype=jnp.int32)

    # chunk_steps=4 -> grid of 2 S-chunks, exercising the carried h/c state.
    out, cell = jax.block_until_ready(
        bilstm_tagger_forward(ids, params, chunk_steps=4))
    ref_out, ref_cell = jax.block_until_ready(reference_forward(ids, params))

    assert out.shape == (BATCH, 50) and cell.shape == (2, BATCH, HIDDEN)
    # Tolerance accounts for bf16 MXU operands / bf16 gx scratch vs f32 ref.
    np.testing.assert_allclose(np.asarray(out), np.asarray(ref_out),
                               rtol=5e-2, atol=5e-2)
    np.testing.assert_allclose(np.asarray(cell), np.asarray(ref_cell),
                               rtol=5e-2, atol=5e-2)
    print("KERNEL_OK")
</pallas_src>

<mosaic_0001>
module attributes {stable_mosaic.version = 11 : i64} {
  func.func @bilstm_kernel(%arg0: i32, %arg1: memref<32x16xbf16, #tpu.memory_space<vmem>>, %arg2: memref<32x16xbf16, #tpu.memory_space<vmem>>, %arg3: memref<16x256xbf16, #tpu.memory_space<vmem>>, %arg4: memref<16x256xbf16, #tpu.memory_space<vmem>>, %arg5: memref<64x256xbf16, #tpu.memory_space<vmem>>, %arg6: memref<1x256xf32, #tpu.memory_space<vmem>>, %arg7: memref<64x128xbf16, #tpu.memory_space<vmem>>, %arg8: memref<1x128xf32, #tpu.memory_space<vmem>>, %arg9: memref<8x128xf32, #tpu.memory_space<vmem>>, %arg10: memref<8x128xf32, #tpu.memory_space<vmem>>, %arg11: memref<8x64xf32, #tpu.memory_space<vmem>>, %arg12: memref<8x64xf32, #tpu.memory_space<vmem>>, %arg13: memref<32x256xbf16, #tpu.memory_space<vmem>>, %arg14: memref<32x256xbf16, #tpu.memory_space<vmem>>) attributes {dimension_semantics = [#tpu.dimension_semantics<arbitrary>], iteration_bounds = array<i64: 2>, scalar_prefetch = 0 : i64, scratch_operands = 4 : i64, tpu.core_type = #tpu.core_type<tc>, window_params = [{transform_indices = @transform_0, window_bounds = array<i64: 32, 16>}, {transform_indices = @transform_1, window_bounds = array<i64: 32, 16>}, {pipeline_mode = #tpu.pipeline_mode<synchronous>, transform_indices = @transform_2, window_bounds = array<i64: 16, 256>}, {pipeline_mode = #tpu.pipeline_mode<synchronous>, transform_indices = @transform_3, window_bounds = array<i64: 16, 256>}, {pipeline_mode = #tpu.pipeline_mode<synchronous>, transform_indices = @transform_4, window_bounds = array<i64: 64, 256>}, {pipeline_mode = #tpu.pipeline_mode<synchronous>, transform_indices = @transform_5, window_bounds = array<i64: 1, 256>}, {pipeline_mode = #tpu.pipeline_mode<synchronous>, transform_indices = @transform_6, window_bounds = array<i64: 64, 128>}, {pipeline_mode = #tpu.pipeline_mode<synchronous>, transform_indices = @transform_7, window_bounds = array<i64: 1, 128>}, {pipeline_mode = #tpu.pipeline_mode<synchronous>, transform_indices = @transform_8, window_bounds = array<i64: 8, 128>}, {pipeline_mode = #tpu.pipeline_mode<synchronous>, transform_indices = @transform_9, window_bounds = array<i64: 8, 128>}]} {
    %c0_i32 = arith.constant 0 : i32
    %0 = arith.cmpi eq, %arg0, %c0_i32 : i32
    %1 = arith.extui %0 : i1 to i32
    %c0_i32_0 = arith.constant 0 : i32
    %2 = arith.cmpi ne, %1, %c0_i32_0 : i32
    scf.if %2 {
      %cst_59 = arith.constant 0.000000e+00 : f32
      %150 = vector.broadcast %cst_59 : f32 to vector<8x64xf32>
      %c0_60 = arith.constant 0 : index
      %c0_61 = arith.constant 0 : index
      %151 = vector.load %arg11[%c0_60, %c0_61] : memref<8x64xf32, #tpu.memory_space<vmem>>, vector<8x64xf32>
      tpu.vector_store %arg11[%c0_60, %c0_61], %150 {strides = array<i32>} : memref<8x64xf32, #tpu.memory_space<vmem>>, vector<8x64xf32>,
      %cst_62 = arith.constant 0.000000e+00 : f32
      %152 = vector.broadcast %cst_62 : f32 to vector<8x64xf32>
      %c0_63 = arith.constant 0 : index
      %c0_64 = arith.constant 0 : index
      %153 = vector.load %arg12[%c0_63, %c0_64] : memref<8x64xf32, #tpu.memory_space<vmem>>, vector<8x64xf32>
      tpu.vector_store %arg12[%c0_63, %c0_64], %152 {strides = array<i32>} : memref<8x64xf32, #tpu.memory_space<vmem>>, vector<8x64xf32>,
    } else {
    }
    %c0 = arith.constant 0 : index
    %c0_1 = arith.constant 0 : index
    %3 = vector.load %arg1[%c0, %c0_1] : memref<32x16xbf16, #tpu.memory_space<vmem>>, vector<32x16xbf16>
    %c0_2 = arith.constant 0 : index
    %c0_3 = arith.constant 0 : index
    %4 = vector.load %arg3[%c0_2, %c0_3] : memref<16x256xbf16, #tpu.memory_space<vmem>>, vector<16x256xbf16>
    %cst = arith.constant dense<0.000000e+00> : vector<32x256xf32>
    %5 = tpu.matmul %3, %4, %cst {dimension_numbers = #tpu.dot_dimension_numbers<[1], [0], [0], [1], [0, 0, 1, 1], [], []>} : vector<32x16xbf16>, vector<16x256xbf16>, vector<32x256xf32> -> vector<32x256xf32>
    %6 = arith.truncf %5 : vector<32x256xf32> to vector<32x256xbf16>
    %c0_4 = arith.constant 0 : index
    %c0_5 = arith.constant 0 : index
    %7 = vector.load %arg13[%c0_4, %c0_5] : memref<32x256xbf16, #tpu.memory_space<vmem>>, vector<32x256xbf16>
    tpu.vector_store %arg13[%c0_4, %c0_5], %6 {strides = array<i32>} : memref<32x256xbf16, #tpu.memory_space<vmem>>, vector<32x256xbf16>,
    %c0_6 = arith.constant 0 : index
    %c0_7 = arith.constant 0 : index
    %8 = vector.load %arg2[%c0_6, %c0_7] : memref<32x16xbf16, #tpu.memory_space<vmem>>, vector<32x16xbf16>
    %c0_8 = arith.constant 0 : index
    %c0_9 = arith.constant 0 : index
    %9 = vector.load %arg4[%c0_8, %c0_9] : memref<16x256xbf16, #tpu.memory_space<vmem>>, vector<16x256xbf16>
    %cst_10 = arith.constant dense<0.000000e+00> : vector<32x256xf32>
    %10 = tpu.matmul %8, %9, %cst_10 {dimension_numbers = #tpu.dot_dimension_numbers<[1], [0], [0], [1], [0, 0, 1, 1], [], []>} : vector<32x16xbf16>, vector<16x256xbf16>, vector<32x256xf32> -> vector<32x256xf32>
    %11 = arith.truncf %10 : vector<32x256xf32> to vector<32x256xbf16>
    %c0_11 = arith.constant 0 : index
    %c0_12 = arith.constant 0 : index
    %12 = vector.load %arg14[%c0_11, %c0_12] : memref<32x256xbf16, #tpu.memory_space<vmem>>, vector<32x256xbf16>
    tpu.vector_store %arg14[%c0_11, %c0_12], %11 {strides = array<i32>} : memref<32x256xbf16, #tpu.memory_space<vmem>>, vector<32x256xbf16>,
    %c0_13 = arith.constant 0 : index
    %c0_14 = arith.constant 0 : index
    %13 = vector.load %arg5[%c0_13, %c0_14] : memref<64x256xbf16, #tpu.memory_space<vmem>>, vector<64x256xbf16>
    %c0_15 = arith.constant 0 : index
    %c0_16 = arith.constant 0 : index
    %14 = vector.load %arg6[%c0_15, %c0_16] : memref<1x256xf32, #tpu.memory_space<vmem>>, vector<1x256xf32>
    %c0_17 = arith.constant 0 : index
    %c0_18 = arith.constant 0 : index
    %15 = vector.load %arg11[%c0_17, %c0_18] : memref<8x64xf32, #tpu.memory_space<vmem>>, vector<8x64xf32>
    %c0_19 = arith.constant 0 : index
    %c0_20 = arith.constant 0 : index
    %16 = vector.load %arg12[%c0_19, %c0_20] : memref<8x64xf32, #tpu.memory_space<vmem>>, vector<8x64xf32>
    %c0_i32_21 = arith.constant 0 : i32
    %c8_i32 = arith.constant 8 : i32
    %17 = arith.muli %c0_i32_21, %c8_i32 : i32
    %18 = tpu.assume_multiple %17, 8 : i32
    %c3_i32 = arith.constant 3 : i32
    %19 = arith.subi %c3_i32, %c0_i32_21 : i32
    %c8_i32_22 = arith.constant 8 : i32
    %20 = arith.muli %19, %c8_i32_22 : i32
    %21 = tpu.assume_multiple %20, 8 : i32
    %22 = arith.index_cast %18 : i32 to index
    %c0_23 = arith.constant 0 : index
    %23 = vector.load %arg13[%22, %c0_23] : memref<32x256xbf16, #tpu.memory_space<vmem>>, vector<8x256xbf16>
    %24 = arith.extf %23 : vector<8x256xbf16> to vector<8x256xf32>
    %25 = arith.index_cast %21 : i32 to index
    %c0_24 = arith.constant 0 : index
    %26 = vector.load %arg14[%25, %c0_24] : memref<32x256xbf16, #tpu.memory_space<vmem>>, vector<8x256xbf16>
    %27 = arith.extf %26 : vector<8x256xbf16> to vector<8x256xf32>
    %28 = arith.addf %24, %27 : vector<8x256xf32>
    %29 = vector.broadcast %14 : vector<1x256xf32> to vector<8x256xf32>
    %30 = arith.addf %28, %29 : vector<8x256xf32>
    %31 = arith.truncf %15 : vector<8x64xf32> to vector<8x64xbf16>
    %cst_25 = arith.constant dense<0.000000e+00> : vector<8x256xf32>
    %32 = tpu.matmul %31, %13, %cst_25 {dimension_numbers = #tpu.dot_dimension_numbers<[1], [0], [0], [1], [0, 0, 1, 1], [], []>} : vector<8x64xbf16>, vector<64x256xbf16>, vector<8x256xf32> -> vector<8x256xf32>
    %33 = arith.addf %30, %32 : vector<8x256xf32>
    %34 = math.tanh %33 : vector<8x256xf32>
    %35 = vector.extract_strided_slice %34 {offsets = [0, 0], sizes = [8, 192], strides = [1, 1]} : vector<8x256xf32> to vector<8x192xf32>
    %cst_26 = arith.constant 1.000000e+00 : f32
    %36 = vector.broadcast %cst_26 : f32 to vector<8x192xf32>
    %37 = arith.addf %35, %36 : vector<8x192xf32>
    %cst_27 = arith.constant 5.000000e-01 : f32
    %38 = vector.broadcast %cst_27 : f32 to vector<8x192xf32>
    %39 = arith.mulf %38, %37 : vector<8x192xf32>
    %40 = vector.extract_strided_slice %39 {offsets = [0, 0], sizes = [8, 64], strides = [1, 1]} : vector<8x192xf32> to vector<8x64xf32>
    %41 = vector.extract_strided_slice %39 {offsets = [0, 64], sizes = [8, 64], strides = [1, 1]} : vector<8x192xf32> to vector<8x64xf32>
    %42 = vector.extract_strided_slice %39 {offsets = [0, 128], sizes = [8, 64], strides = [1, 1]} : vector<8x192xf32> to vector<8x64xf32>
    %43 = vector.extract_strided_slice %34 {offsets = [0, 192], sizes = [8, 64], strides = [1, 1]} : vector<8x256xf32> to vector<8x64xf32>
    %44 = arith.mulf %41, %16 : vector<8x64xf32>
    %45 = arith.mulf %40, %43 : vector<8x64xf32>
    %46 = arith.addf %44, %45 : vector<8x64xf32>
    %47 = math.tanh %46 : vector<8x64xf32>
    %48 = arith.mulf %42, %47 : vector<8x64xf32>
    %c1_i32 = arith.constant 1 : i32
    %c8_i32_28 = arith.constant 8 : i32
    %49 = arith.muli %c1_i32, %c8_i32_28 : i32
    %50 = tpu.assume_multiple %49, 8 : i32
    %c3_i32_29 = arith.constant 3 : i32
    %51 = arith.subi %c3_i32_29, %c1_i32 : i32
    %c8_i32_30 = arith.constant 8 : i32
    %52 = arith.muli %51, %c8_i32_30 : i32
    %53 = tpu.assume_multiple %52, 8 : i32
    %54 = arith.index_cast %50 : i32 to index
    %c0_31 = arith.constant 0 : index
    %55 = vector.load %arg13[%54, %c0_31] : memref<32x256xbf16, #tpu.memory_space<vmem>>, vector<8x256xbf16>
    %56 = arith.extf %55 : vector<8x256xbf16> to vector<8x256xf32>
    %57 = arith.index_cast %53 : i32 to index
    %c0_32 = arith.constant 0 : index
    %58 = vector.load %arg14[%57, %c0_32] : memref<32x256xbf16, #tpu.memory_space<vmem>>, vector<8x256xbf16>
    %59 = arith.extf %58 : vector<8x256xbf16> to vector<8x256xf32>
    %60 = arith.addf %56, %59 : vector<8x256xf32>
    %61 = vector.broadcast %14 : vector<1x256xf32> to vector<8x256xf32>
    %62 = arith.addf %60, %61 : vector<8x256xf32>
    %63 = arith.truncf %48 : vector<8x64xf32> to vector<8x64xbf16>
    %cst_33 = arith.constant dense<0.000000e+00> : vector<8x256xf32>
    %64 = tpu.matmul %63, %13, %cst_33 {dimension_numbers = #tpu.dot_dimension_numbers<[1], [0], [0], [1], [0, 0, 1, 1], [], []>} : vector<8x64xbf16>, vector<64x256xbf16>, vector<8x256xf32> -> vector<8x256xf32>
    %65 = arith.addf %62, %64 : vector<8x256xf32>
    %66 = math.tanh %65 : vector<8x256xf32>
    %67 = vector.extract_strided_slice %66 {offsets = [0, 0], sizes = [8, 192], strides = [1, 1]} : vector<8x256xf32> to vector<8x192xf32>
    %cst_34 = arith.constant 1.000000e+00 : f32
    %68 = vector.broadcast %cst_34 : f32 to vector<8x192xf32>
    %69 = arith.addf %67, %68 : vector<8x192xf32>
    %cst_35 = arith.constant 5.000000e-01 : f32
    %70 = vector.broadcast %cst_35 : f32 to vector<8x192xf32>
    %71 = arith.mulf %70, %69 : vector<8x192xf32>
    %72 = vector.extract_strided_slice %71 {offsets = [0, 0], sizes = [8, 64], strides = [1, 1]} : vector<8x192xf32> to vector<8x64xf32>
    %73 = vector.extract_strided_slice %71 {offsets = [0, 64], sizes = [8, 64], strides = [1, 1]} : vector<8x192xf32> to vector<8x64xf32>
    %74 = vector.extract_strided_slice %71 {offsets = [0, 128], sizes = [8, 64], strides = [1, 1]} : vector<8x192xf32> to vector<8x64xf32>
    %75 = vector.extract_strided_slice %66 {offsets = [0, 192], sizes = [8, 64], strides = [1, 1]} : vector<8x256xf32> to vector<8x64xf32>
    %76 = arith.mulf %73, %46 : vector<8x64xf32>
    %77 = arith.mulf %72, %75 : vector<8x64xf32>
    %78 = arith.addf %76, %77 : vector<8x64xf32>
    %79 = math.tanh %78 : vector<8x64xf32>
    %80 = arith.mulf %74, %79 : vector<8x64xf32>
    %c2_i32 = arith.constant 2 : i32
    %c8_i32_36 = arith.constant 8 : i32
    %81 = arith.muli %c2_i32, %c8_i32_36 : i32
    %82 = tpu.assume_multiple %81, 8 : i32
    %c3_i32_37 = arith.constant 3 : i32
    %83 = arith.subi %c3_i32_37, %c2_i32 : i32
    %c8_i32_38 = arith.constant 8 : i32
    %84 = arith.muli %83, %c8_i32_38 : i32
    %85 = tpu.assume_multiple %84, 8 : i32
    %86 = arith.index_cast %82 : i32 to index
    %c0_39 = arith.constant 0 : index
    %87 = vector.load %arg13[%86, %c0_39] : memref<32x256xbf16, #tpu.memory_space<vmem>>, vector<8x256xbf16>
    %88 = arith.extf %87 : vector<8x256xbf16> to vector<8x256xf32>
    %89 = arith.index_cast %85 : i32 to index
    %c0_40 = arith.constant 0 : index
    %90 = vector.load %arg14[%89, %c0_40] : memref<32x256xbf16, #tpu.memory_space<vmem>>, vector<8x256xbf16>
    %91 = arith.extf %90 : vector<8x256xbf16> to vector<8x256xf32>
    %92 = arith.addf %88, %91 : vector<8x256xf32>
    %93 = vector.broadcast %14 : vector<1x256xf32> to vector<8x256xf32>
    %94 = arith.addf %92, %93 : vector<8x256xf32>
    %95 = arith.truncf %80 : vector<8x64xf32> to vector<8x64xbf16>
    %cst_41 = arith.constant dense<0.000000e+00> : vector<8x256xf32>
    %96 = tpu.matmul %95, %13, %cst_41 {dimension_numbers = #tpu.dot_dimension_numbers<[1], [0], [0], [1], [0, 0, 1, 1], [], []>} : vector<8x64xbf16>, vector<64x256xbf16>, vector<8x256xf32> -> vector<8x256xf32>
    %97 = arith.addf %94, %96 : vector<8x256xf32>
    %98 = math.tanh %97 : vector<8x256xf32>
    %99 = vector.extract_strided_slice %98 {offsets = [0, 0], sizes = [8, 192], strides = [1, 1]} : vector<8x256xf32> to vector<8x192xf32>
    %cst_42 = arith.constant 1.000000e+00 : f32
    %100 = vector.broadcast %cst_42 : f32 to vector<8x192xf32>
    %101 = arith.addf %99, %100 : vector<8x192xf32>
    %cst_43 = arith.constant 5.000000e-01 : f32
    %102 = vector.broadcast %cst_43 : f32 to vector<8x192xf32>
    %103 = arith.mulf %102, %101 : vector<8x192xf32>
    %104 = vector.extract_strided_slice %103 {offsets = [0, 0], sizes = [8, 64], strides = [1, 1]} : vector<8x192xf32> to vector<8x64xf32>
    %105 = vector.extract_strided_slice %103 {offsets = [0, 64], sizes = [8, 64], strides = [1, 1]} : vector<8x192xf32> to vector<8x64xf32>
    %106 = vector.extract_strided_slice %103 {offsets = [0, 128], sizes = [8, 64], strides = [1, 1]} : vector<8x192xf32> to vector<8x64xf32>
    %107 = vector.extract_strided_slice %98 {offsets = [0, 192], sizes = [8, 64], strides = [1, 1]} : vector<8x256xf32> to vector<8x64xf32>
    %108 = arith.mulf %105, %78 : vector<8x64xf32>
    %109 = arith.mulf %104, %107 : vector<8x64xf32>
    %110 = arith.addf %108, %109 : vector<8x64xf32>
    %111 = math.tanh %110 : vector<8x64xf32>
    %112 = arith.mulf %106, %111 : vector<8x64xf32>
    %c3_i32_44 = arith.constant 3 : i32
    %c8_i32_45 = arith.constant 8 : i32
    %113 = arith.muli %c3_i32_44, %c8_i32_45 : i32
    %114 = tpu.assume_multiple %113, 8 : i32
    %c3_i32_46 = arith.constant 3 : i32
    %115 = arith.subi %c3_i32_46, %c3_i32_44 : i32
    %c8_i32_47 = arith.constant 8 : i32
    %116 = arith.muli %115, %c8_i32_47 : i32
    %117 = tpu.assume_multiple %116, 8 : i32
    %118 = arith.index_cast %114 : i32 to index
    %c0_48 = arith.constant 0 : index
    %119 = vector.load %arg13[%118, %c0_48] : memref<32x256xbf16, #tpu.memory_space<vmem>>, vector<8x256xbf16>
    %120 = arith.extf %119 : vector<8x256xbf16> to vector<8x256xf32>
    %121 = arith.index_cast %117 : i32 to index
    %c0_49 = arith.constant 0 : index
    %122 = vector.load %arg14[%121, %c0_49] : memref<32x256xbf16, #tpu.memory_space<vmem>>, vector<8x256xbf16>
    %123 = arith.extf %122 : vector<8x256xbf16> to vector<8x256xf32>
    %124 = arith.addf %120, %123 : vector<8x256xf32>
    %125 = vector.broadcast %14 : vector<1x256xf32> to vector<8x256xf32>
    %126 = arith.addf %124, %125 : vector<8x256xf32>
    %127 = arith.truncf %112 : vector<8x64xf32> to vector<8x64xbf16>
    %cst_50 = arith.constant dense<0.000000e+00> : vector<8x256xf32>
    %128 = tpu.matmul %127, %13, %cst_50 {dimension_numbers = #tpu.dot_dimension_numbers<[1], [0], [0], [1], [0, 0, 1, 1], [], []>} : vector<8x64xbf16>, vector<64x256xbf16>, vector<8x256xf32> -> vector<8x256xf32>
    %129 = arith.addf %126, %128 : vector<8x256xf32>
    %130 = math.tanh %129 : vector<8x256xf32>
    %131 = vector.extract_strided_slice %130 {offsets = [0, 0], sizes = [8, 192], strides = [1, 1]} : vector<8x256xf32> to vector<8x192xf32>
    %cst_51 = arith.constant 1.000000e+00 : f32
    %132 = vector.broadcast %cst_51 : f32 to vector<8x192xf32>
    %133 = arith.addf %131, %132 : vector<8x192xf32>
    %cst_52 = arith.constant 5.000000e-01 : f32
    %134 = vector.broadcast %cst_52 : f32 to vector<8x192xf32>
    %135 = arith.mulf %134, %133 : vector<8x192xf32>
    %136 = vector.extract_strided_slice %135 {offsets = [0, 0], sizes = [8, 64], strides = [1, 1]} : vector<8x192xf32> to vector<8x64xf32>
    %137 = vector.extract_strided_slice %135 {offsets = [0, 64], sizes = [8, 64], strides = [1, 1]} : vector<8x192xf32> to vector<8x64xf32>
    %138 = vector.extract_strided_slice %135 {offsets = [0, 128], sizes = [8, 64], strides = [1, 1]} : vector<8x192xf32> to vector<8x64xf32>
    %139 = vector.extract_strided_slice %130 {offsets = [0, 192], sizes = [8, 64], strides = [1, 1]} : vector<8x256xf32> to vector<8x64xf32>
    %140 = arith.mulf %137, %110 : vector<8x64xf32>
    %141 = arith.mulf %136, %139 : vector<8x64xf32>
    %142 = arith.addf %140, %141 : vector<8x64xf32>
    %143 = math.tanh %142 : vector<8x64xf32>
    %144 = arith.mulf %138, %143 : vector<8x64xf32>
    %c4_i32 = arith.constant 4 : i32
    %c0_53 = arith.constant 0 : index
    %c0_54 = arith.constant 0 : index
    %145 = vector.load %arg11[%c0_53, %c0_54] : memref<8x64xf32, #tpu.memory_space<vmem>>, vector<8x64xf32>
    tpu.vector_store %arg11[%c0_53, %c0_54], %144 {strides = array<i32>} : memref<8x64xf32, #tpu.memory_space<vmem>>, vector<8x64xf32>,
    %c0_55 = arith.constant 0 : index
    %c0_56 = arith.constant 0 : index
    %146 = vector.load %arg12[%c0_55, %c0_56] : memref<8x64xf32, #tpu.memory_space<vmem>>, vector<8x64xf32>
    tpu.vector_store %arg12[%c0_55, %c0_56], %142 {strides = array<i32>} : memref<8x64xf32, #tpu.memory_space<vmem>>, vector<8x64xf32>,
    %c1_i32_57 = arith.constant 1 : i32
    %147 = arith.cmpi eq, %arg0, %c1_i32_57 : i32
    %148 = arith.extui %147 : i1 to i32
    %c0_i32_58 = arith.constant 0 : i32
    %149 = arith.cmpi ne, %148, %c0_i32_58 : i32
    scf.if %149 {
      %150 = arith.truncf %144 : vector<8x64xf32> to vector<8x64xbf16>
      %c0_59 = arith.constant 0 : index
      %c0_60 = arith.constant 0 : index
      %151 = vector.load %arg7[%c0_59, %c0_60] : memref<64x128xbf16, #tpu.memory_space<vmem>>, vector<64x128xbf16>
      %cst_61 = arith.constant dense<0.000000e+00> : vector<8x128xf32>
      %152 = tpu.matmul %150, %151, %cst_61 {dimension_numbers = #tpu.dot_dimension_numbers<[1], [0], [0], [1], [0, 0, 1, 1], [], []>} : vector<8x64xbf16>, vector<64x128xbf16>, vector<8x128xf32> -> vector<8x128xf32>
      %c0_62 = arith.constant 0 : index
      %c0_63 = arith.constant 0 : index
      %153 = vector.load %arg8[%c0_62, %c0_63] : memref<1x128xf32, #tpu.memory_space<vmem>>, vector<1x128xf32>
      %154 = vector.broadcast %153 : vector<1x128xf32> to vector<8x128xf32>
      %155 = arith.addf %152, %154 : vector<8x128xf32>
      %c0_64 = arith.constant 0 : index
      %c0_65 = arith.constant 0 : index
      %156 = vector.load %arg9[%c0_64, %c0_65] : memref<8x128xf32, #tpu.memory_space<vmem>>, vector<8x128xf32>
      tpu.vector_store %arg9[%c0_64, %c0_65], %155 {strides = array<i32>} : memref<8x128xf32, #tpu.memory_space<vmem>>, vector<8x128xf32>,
      %cst_66 = arith.constant 0.000000e+00 : f32
      %157 = vector.broadcast %cst_66 : f32 to vector<8x64xf32>
      %158 = tpu.concatenate %142, %157 in 1 : vector<8x64xf32>, vector<8x64xf32> -> vector<8x128xf32>
      %c0_67 = arith.constant 0 : index
      %c0_68 = arith.constant 0 : index
      %159 = vector.load %arg10[%c0_67, %c0_68] : memref<8x128xf32, #tpu.memory_space<vmem>>, vector<8x128xf32>
      tpu.vector_store %arg10[%c0_67, %c0_68], %158 {strides = array<i32>} : memref<8x128xf32, #tpu.memory_space<vmem>>, vector<8x128xf32>,
    } else {
    }
    return
  }
  func.func @transform_0(%arg0: i32) -> (i32, i32) {
    %c0_i32 = arith.constant 0 : i32
    %c0_i32_0 = arith.constant 0 : i32
    return %arg0, %c0_i32 : i32, i32
  }
  func.func @transform_1(%arg0: i32) -> (i32, i32) {
    %c1_i32 = arith.constant 1 : i32
    %0 = arith.subi %c1_i32, %arg0 : i32
    %c0_i32 = arith.constant 0 : i32
    %c0_i32_0 = arith.constant 0 : i32
    return %0, %c0_i32 : i32, i32
  }
  func.func @transform_2(%arg0: i32) -> (i32, i32) {
    %c0_i32 = arith.constant 0 : i32
    %c0_i32_0 = arith.constant 0 : i32
    %c0_i32_1 = arith.constant 0 : i32
    return %c0_i32, %c0_i32_0 : i32, i32
  }
  func.func @transform_3(%arg0: i32) -> (i32, i32) {
    %c0_i32 = arith.constant 0 : i32
    %c0_i32_0 = arith.constant 0 : i32
    %c0_i32_1 = arith.constant 0 : i32
    return %c0_i32, %c0_i32_0 : i32, i32
  }
  func.func @transform_4(%arg0: i32) -> (i32, i32) {
    %c0_i32 = arith.constant 0 : i32
    %c0_i32_0 = arith.constant 0 : i32
    %c0_i32_1 = arith.constant 0 : i32
    return %c0_i32, %c0_i32_0 : i32, i32
  }
  func.func @transform_5(%arg0: i32) -> (i32, i32) {
    %c0_i32 = arith.constant 0 : i32
    %c0_i32_0 = arith.constant 0 : i32
    %c0_i32_1 = arith.constant 0 : i32
    return %c0_i32, %c0_i32_0 : i32, i32
  }
  func.func @transform_6(%arg0: i32) -> (i32, i32) {
    %c0_i32 = arith.constant 0 : i32
    %c0_i32_0 = arith.constant 0 : i32
    %c0_i32_1 = arith.constant 0 : i32
    return %c0_i32, %c0_i32_0 : i32, i32
  }
  func.func @transform_7(%arg0: i32) -> (i32, i32) {
    %c0_i32 = arith.constant 0 : i32
    %c0_i32_0 = arith.constant 0 : i32
    %c0_i32_1 = arith.constant 0 : i32
    return %c0_i32, %c0_i32_0 : i32, i32
  }
  func.func @transform_8(%arg0: i32) -> (i32, i32) {
    %c0_i32 = arith.constant 0 : i32
    %c0_i32_0 = arith.constant 0 : i32
    %c0_i32_1 = arith.constant 0 : i32
    return %c0_i32, %c0_i32_0 : i32, i32
  }
  func.func @transform_9(%arg0: i32) -> (i32, i32) {
    %c0_i32 = arith.constant 0 : i32
    %c0_i32_0 = arith.constant 0 : i32
    %c0_i32_1 = arith.constant 0 : i32
    return %c0_i32, %c0_i32_0 : i32, i32
  }
}

</mosaic_0001>

<bundles_post_ra>
// kernel: tpu_custom_call.1
= control target key start
LH: loop header
LB: loop body
LE: loop exit
PB: predicated region body
PF: predicated region fallthrough
CT: control target
= control target key end

     0   :  { %15 = vsyncpa [#allocation7], 0  ;;  %s1736_s0 = inlined_call_operand.vmem [shape: bf16[64,16], index: 0, kind: input, shape index: {}]   ;;  %s1737_s1 = inlined_call_operand.vmem [shape: bf16[64,16], index: 1, kind: input, shape index: {}]   ;;  %s1738_s2 = inlined_call_operand.hbm [shape: bf16[16,256], index: 2, kind: input, shape index: {}]   ;;  %s1739_s3 = inlined_call_operand.hbm [shape: bf16[16,256], index: 3, kind: input, shape index: {}]   ;;  %s1740_s4 = inlined_call_operand.vmem [shape: bf16[64,256], index: 4, kind: input, shape index: {}]   ;;  %s1741_s5 = inlined_call_operand.vmem [shape: f32[1,256], index: 5, kind: input, shape index: {}]   ;;  %s1742_s6 = inlined_call_operand.hbm [shape: bf16[64,128], index: 6, kind: input, shape index: {}]   ;;  %s1743_s7 = inlined_call_operand.vmem [shape: f32[1,128], index: 7, kind: input, shape index: {}]   ;;  %s1744_s8 = inlined_call_operand.hbm [shape: f32[8,128], index: 8, kind: output, shape index: {0}]   ;;  %s1745_s9 = inlined_call_operand.hbm [shape: f32[8,128], index: 9, kind: output, shape index: {1}]  }
   0x1   :  { %16 = vsyncpa [#allocation10], 0 }
   0x2   :  { %17 = vsyncpa [#allocation8], 0 }
   0x3   :  { %18 = vsyncpa [#allocation14], 0  ;;  %s1546_s30 = smov 0  }
   0x4 LB: > { %s1552_s10 = sadd.s32 4294967295, %s1483_s30   ;;  %p1093_p0 = scmp.ge.s32.totalorder %s1483_s30, 1  ;;  %s1483_s30 = sphi %s1546_s30, %s24_s30  }
   0x5   : > { %p251_p1 = scmp.lt.s32.totalorder %s1483_s30, 3  ;;  %p1094_p2 = scmp.ne.s32.totalorder %s1552_s10, 0 }
   0x6   : > { %p1261_p3 = scmp.eq.s32.totalorder %s1552_s10, 0  ;;  %s276_s13 = sshll.u32 %s1739_s3, 4  ;;  %s277_s13 = int_to_ptr.hbm [resolvable:$true] %s276_s13 }
   0x7   : > { %p1561_p4 = pnand %p1093_p0, %p251_p1  ;;  %s262_s17 = sshll.u32 %s1738_s2, 4  ;;  %s263_s17 = int_to_ptr.hbm [resolvable:$true] %s262_s17 }
   0x8   : > { %s1485_s18 = smov [#allocation9]   ;;  %s1486_s21 = smov [#allocation6]  }
   0x9   : > { %p1251_p5 = pneg %p1561_p4  ;;  %s278_s19 = sshll.u32 %s1485_s18, 4  ;;  %s279_s19 = int_to_ptr.vmem [resolvable:$true] %s278_s19 }
   0xa   : > { %s264_s22 = sshll.u32 %s1486_s21, 4  ;;  %s296_s25 = sshll.u32 %s1742_s6, 4  ;;  %s265_s22 = int_to_ptr.vmem [resolvable:$true] %s264_s22  ;;  %s297_s25 = int_to_ptr.hbm [resolvable:$true] %s296_s25 }
   0xb   : > { %p1572_p6 = pnand %p1261_p3, %p1251_p5  ;;  %s1487_s26 = smov 128  }
   0xc   : > { %s1488_s27 = smov 8   ;;  %s1489_s28 = smov [#allocation11]  }
   0xd   : > { %1257 = dma.hbm_to_vmem [thread:$0]  (!%p1572_p6), %s277_s13, 256, %s279_s19, [#allocation10], %s1487_s26, %s1487_s26, %s1488_s27  }
   0xe   : > { %1254 = dma.hbm_to_vmem [thread:$0]  (!%p1572_p6), %s263_s17, 256, %s265_s22, [#allocation7], %s1487_s26, %s1487_s26, %s1488_s27  }
   0xf   : > { %s298_s29 = sshll.u32 %s1489_s28, 4  ;;  %s1490_s11 = smov 64   ;;  %s299_s29 = int_to_ptr.vmem [resolvable:$true] %s298_s29 }
  0x10   : > { %s1491_s12 = smov 4   ;;  %337 = sbr.rel (%p1561_p4) target bundleno = 2135 (0x857), region = 52 }
  0x11   : > { %1260 = dma.hbm_to_vmem [thread:$0]  (!%p1572_p6), %s297_s25, 512, %s299_s29, [#allocation10], %s1490_s11, %s1490_s11, %s1491_s12  }
  0x15   : > { %1466 = dma.done.wait (%p1261_p3), [#allocation7], 256  }
  0x16   : > { %1468 = vsyncadd (%p1261_p3), [#allocation7], 4294967040 }
  0x17   : > { %1470 = dma.done.wait (%p1261_p3), [#allocation10], 768  }
  0x18   : > { %1472 = vsyncadd (%p1261_p3), [#allocation10], 4294966528  ;;  %s1102_s13 = sshll.u32 %s1552_s10, 2  ;;  %s391_s15 = ssub.s32 1, %s1552_s10 }
  0x19   : > { %p386_p7 = scmp.lt.s32.totalorder %s1102_s13, 7  ;;  %s1104_s16 = sshll.u32 %s391_s15, 2 }
  0x1a   : > { %p393_p8 = scmp.lt.s32.totalorder %s1104_s16, 7  ;;  %403 = sbr.rel (%p1094_p2) target bundleno = 34 (0x22), region = 68 }
  0x1b   : > { %s1749_s13 = smov (!%p386_p7, %s1102_s13), 7 }
  0x1c   : > { %s1751_s16 = smov (!%p393_p8, %s1104_s16), 7  ;;  %s1103_s14 = sshll.u32 %s1749_s13, 2 }
  0x1d   : > { %s1600_s19 = scalar_lea.vmem %s1736_s0, %s1103_s14  ;;  %s1105_s20 = sshll.u32 %s1751_s16, 2 }
  0x1e   : > { %s1605_s23 = scalar_lea.vmem %s1737_s1, %s1105_s20 }
  0x1f   : > { %vm404_vm0 = vcmask 523264   ;;  %v1492_v0 = vmov 0.0  }
  0x20   : > { %405 = vst.msk [vmem:[#allocation2] sm:$0xff] %vm404_vm0, %v1492_v0 }
  0x21   : > { %406 = vst.msk [vmem:[#allocation3] sm:$0xff] %vm404_vm0, %v1492_v0 }
  0x22 PF: > { %v1117_v1 = vld [vmem:[#allocation6] sm:$0xf]  ;;  %v1214_v2 = vld [vmem:[#allocation6 + $0x4] sm:$0xf0]  ;;  %v1213_v3 = vld [vmem:[#allocation6 + $0x4] sm:$0xf] }
  0x23   : > { %v1118_v4 = vor.u32 %v1214_v2, %v1117_v1  ;;  %v1119_v5 = vld [vmem:[#allocation6 + $0x8] sm:$0xf0]  ;;  %v1137_v6 = vld [vmem:[#allocation9] sm:$0xf]  ;;  %v1218_v7 = vld [vmem:[#allocation9 + $0x4] sm:$0xf0] }
  0x24   : > { %v1122_v8 = vor.u32 %v1213_v3, %v1119_v5  ;;  %v1138_v9 = vor.u32 %v1218_v7, %v1137_v6  ;;  %v1217_v10 = vld [vmem:[#allocation9 + $0x4] sm:$0xf]  ;;  %v1139_v11 = vld [vmem:[#allocation9 + $0x8] sm:$0xf0]  ;;  %vm433_vm1 = vcmask 130048   ;;  %vm637_vm2 = vcmask 523264  }
  0x25   : > { %v1211_v12 = vld [vmem:[%s1600_s19] sm:$0xff]  ;;  %447 = vmatpush.bf16.msra.mxu0 %v1118_v4  ;;  %v1142_v13 = vor.u32 %v1217_v10, %v1139_v11  ;;  %v1225_v15 = vld [vmem:[%s1740_s4 + $0x34] sm:$0xf]  ;;  %v1175_v16 = vld [vmem:[%s1740_s4 + $0x38] sm:$0xf0]  ;;  %s1493_s21 = smov 64  }
  0x26   : > { %v1215_v14 = vld [vmem:[%s1605_s23] sm:$0xff]  ;;  %466 = vmatpush.bf16.msra.mxu1 %v1122_v8  ;;  %525 = vmatpush.bf16.msra.mxu2 %v1138_v9  ;;  %v1178_v17 = vor.u32 %v1225_v15, %v1175_v16  ;;  %v1167_v19 = vld [vmem:[%s1740_s4 + $0x28] sm:$0xf0]  ;;  %v1173_v21 = vld [vmem:[%s1740_s4 + $0x30] sm:$0xf]  ;;  %p1187_p9 = scmp.ne.s32.totalorder %s1552_s10, 1 }
  0x27   : > { %v1223_v18 = vld [vmem:[%s1740_s4 + $0x24] sm:$0xf]  ;;  %544 = vmatpush.bf16.msra.mxu3 %v1142_v13  ;;  %v1226_v22 = vld [vmem:[%s1740_s4 + $0x34] sm:$0xf0]  ;;  %v1165_v23 = vld [vmem:[%s1740_s4 + $0x20] sm:$0xf] }
  0x28   : > { %1123 = vmatmul.msk.bf16.vlgmr.msra.gmra.mxu0 %vm433_vm1, %v1211_v12  ;;  %v1170_v20 = vor.u32 %v1223_v18, %v1167_v19  ;;  %v1221_v24 = vld [vmem:[%s1740_s4 + $0x14] sm:$0xf]  ;;  %v1159_v25 = vld [vmem:[%s1740_s4 + $0x18] sm:$0xf0]  ;;  %v1174_v26 = vor.u32 %v1226_v22, %v1173_v21  ;;  %v1224_v27 = vld [vmem:[%s1740_s4 + $0x24] sm:$0xf0] }
  0x29   : > { %1125 = vmatmul.msk.bf16.vlgmr.msra.gmra.mxu1 %vm433_vm1, %v1211_v12  ;;  %1143 = vmatmul.msk.bf16.vlgmr.msra.gmra.mxu2 %vm433_vm1, %v1215_v14  ;;  %v1166_v28 = vor.u32 %v1224_v27, %v1165_v23  ;;  %v1162_v29 = vor.u32 %v1221_v24, %v1159_v25  ;;  %v1157_v30 = vld [vmem:[%s1740_s4 + $0x10] sm:$0xf]  ;;  %v1222_v31 = vld [vmem:[%s1740_s4 + $0x14] sm:$0xf0]  ;;  %v1219_v32 = vld [vmem:[%s1740_s4 + $0x4] sm:$0xf] }
  0x2a   : > { %658 = vmatpush.bf16.msrb.mxu1 %v1178_v17  ;;  %1145 = vmatmul.msk.bf16.vlgmr.msra.gmra.mxu3 %vm433_vm1, %v1215_v14  ;;  %v1151_v33 = vld [vmem:[%s1740_s4 + $0x8] sm:$0xf0]  ;;  %v1158_v34 = vor.u32 %v1222_v31, %v1157_v30  ;;  %v1149_v36 = vld [vmem:[%s1740_s4] sm:$0xf]  ;;  %v1220_v37 = vld [vmem:[%s1740_s4 + $0x4] sm:$0xf0] }
  0x2b   : > { %645 = vmatpush.bf16.msrb.mxu0 %v1174_v26  ;;  %733 = vmatpush.bf16.msrb.mxu3 %v1178_v17  ;;  %v1154_v35 = vor.u32 %v1219_v32, %v1151_v33  ;;  %v1150_v38 = vor.u32 %v1220_v37, %v1149_v36  ;;  %v1212_v39 = vld [vmem:[%s1600_s19 + $0x8] sm:$0xff]  ;;  %v573_v41 = vld [vmem:[#allocation2] sm:$0xff] }
  0x2c   : > { %720 = vmatpush.bf16.msrb.mxu2 %v1174_v26  ;;  %v1216_v40 = vld [vmem:[%s1605_s23 + $0x8] sm:$0xff]  ;;  %v596_v42 = vpack.c.bf16 %v573_v41, %v573_v41  ;;  %v572_v54 = vld [vmem:[%s1741_s5] sm:$0x3] }
  0x2d   : > { %v591_v58 = vperm.slane %v572_v54, 1  ;;  %v590_v59 = vperm.slane %v572_v54, 0 }
  0x2e   : > { %659 = vmatpush.bf16.msrb.mxu1 %v1170_v20 }
  0x2f   : > { %646 = vmatpush.bf16.msrb.mxu0 %v1166_v28  ;;  %734 = vmatpush.bf16.msrb.mxu3 %v1170_v20 }
  0x30   : > { %721 = vmatpush.bf16.msrb.mxu2 %v1166_v28 }
  0x32   : > { %660 = vmatpush.bf16.msrb.mxu1 %v1162_v29 }
  0x33   : > { %647 = vmatpush.bf16.msrb.mxu0 %v1158_v34  ;;  %735 = vmatpush.bf16.msrb.mxu3 %v1162_v29 }
  0x34   : > { %722 = vmatpush.bf16.msrb.mxu2 %v1158_v34 }
  0x36   : > { %661 = vmatpush.bf16.msrb.mxu1 %v1154_v35 }
  0x37   : > { %648 = vmatpush.bf16.msrb.mxu0 %v1150_v38  ;;  %736 = vmatpush.bf16.msrb.mxu3 %v1154_v35 }
  0x38   : > { %1124 = vmatmul.msk.bf16.gmra.mxu0 %vm433_vm1, %v1212_v39  ;;  %723 = vmatpush.bf16.msrb.mxu2 %v1150_v38 }
  0x39   : > { %1126 = vmatmul.msk.bf16.gmra.mxu1 %vm433_vm1, %v1212_v39  ;;  %1144 = vmatmul.msk.bf16.gmra.mxu2 %vm433_vm1, %v1216_v40 }
  0x3a   : > { %802 = vmatpush.bf16.msra.mxu1 %v1178_v17  ;;  %1146 = vmatmul.msk.bf16.gmra.mxu3 %vm433_vm1, %v1216_v40 }
  0x3b   : > { %789 = vmatpush.bf16.msra.mxu0 %v1174_v26  ;;  %871 = vmatpush.bf16.msra.mxu3 %v1178_v17 }
  0x3c   : > { %858 = vmatpush.bf16.msra.mxu2 %v1174_v26 }
  0x3e   : > { %803 = vmatpush.bf16.msra.mxu1 %v1170_v20 }
  0x3f   : > { %790 = vmatpush.bf16.msra.mxu0 %v1166_v28  ;;  %872 = vmatpush.bf16.msra.mxu3 %v1170_v20 }
  0x40   : > { %859 = vmatpush.bf16.msra.mxu2 %v1166_v28 }
  0x42   : > { %804 = vmatpush.bf16.msra.mxu1 %v1162_v29 }
  0x43   : > { %791 = vmatpush.bf16.msra.mxu0 %v1158_v34  ;;  %873 = vmatpush.bf16.msra.mxu3 %v1162_v29 }
  0x44   : > { %860 = vmatpush.bf16.msra.mxu2 %v1158_v34 }
  0x46   : > { %805 = vmatpush.bf16.msra.mxu1 %v1154_v35 }
  0x47   : > { %792 = vmatpush.bf16.msra.mxu0 %v1150_v38  ;;  %874 = vmatpush.bf16.msra.mxu3 %v1154_v35 }
  0x48   : > { %1179 = vmatmul.msk.bf16.vlgmr.msrb.gmra.mxu0 %vm637_vm2, %v596_v42  ;;  %861 = vmatpush.bf16.msra.mxu2 %v1150_v38 }
  0x49   : > { %1180 = vmatmul.msk.bf16.vlgmr.msrb.gmra.mxu1 %vm637_vm2, %v596_v42 }
  0xa5   : > { %v449_v43 = vpop.f32.mrf.mxu0 }
  0xa6   : > { %v468_v44 = vpop.f32.mrf.mxu1 }
  0xa7   : > { %v478_v22 = vpack.c.bf16 %v468_v44, %v449_v43 }
  0xa9   : > { %v579_v32 = vunpack.c.l.bf16 %v478_v22  ;;  %v580_v33 = vunpack.c.h.bf16 %v478_v22 }
  0xac   : > { %v527_v45 = vpop.f32.mrf.mxu2 }
  0xad   : > { %v546_v46 = vpop.f32.mrf.mxu3  ;;  %v451_v47 = vpop.f32.mrf.mxu0 }
  0xae   : > { %v556_v48 = vpack.c.bf16 %v546_v46, %v527_v45  ;;  %v470_v49 = vpop.f32.mrf.mxu1  ;;  %v574_v45 = vld [vmem:[#allocation3] sm:$0xff] }
  0xaf   : > { %v479_v50 = vpack.c.bf16 %v470_v49, %v451_v47 }
  0xb0   : > { %v844_v14 = vunpack.c.l.bf16 %v556_v48  ;;  %v845_v15 = vunpack.c.h.bf16 %v556_v48 }
  0xb1   : > { %v700_v10 = vunpack.c.l.bf16 %v479_v50  ;;  %v701_v11 = vunpack.c.h.bf16 %v479_v50 }
  0xb4   : > { %v529_v51 = vpop.f32.mrf.mxu2 }
  0xb5   : > { %v548_v52 = vpop.f32.mrf.mxu3  ;;  %v454_v53 = vpop.f32.mrf.mxu0 }
  0xb6   : > { %v557_v55 = vpack.c.bf16 %v548_v52, %v529_v51  ;;  %v473_v56 = vpop.f32.mrf.mxu1 }
  0xb7   : > { %v480_v57 = vpack.c.bf16 %v473_v56, %v454_v53 }
  0xb8   : > { %v775_v60 = vunpack.c.l.bf16 %v557_v55  ;;  %v776_v61 = vunpack.c.h.bf16 %v557_v55 }
  0xb9   : > { %v770_v62 = vunpack.c.l.bf16 %v480_v57  ;;  %v771_v63 = vunpack.c.h.bf16 %v480_v57 }
  0xbb   : > { %v777_v0 = vadd.f32 %v775_v60, %v770_v62  ;;  %v778_v1 = vadd.f32 %v776_v61, %v771_v63 }
  0xbc   : > { %v532_v2 = vpop.f32.mrf.mxu2 }
  0xbd   : > { %v551_v3 = vpop.f32.mrf.mxu3  ;;  %v456_v4 = vpop.f32.mrf.mxu0  ;;  %v1674_v5 = vadd.f32 %v777_v0, %v590_v59  ;;  %v1676_v6 = vadd.f32 %v778_v1, %v591_v58 }
  0xbe   : > { %v558_v7 = vpack.c.bf16 %v551_v3, %v532_v2  ;;  %v475_v8 = vpop.f32.mrf.mxu1 }
  0xbf   : > { %v481_v9 = vpack.c.bf16 %v475_v8, %v456_v4 }
  0xc0   : > { %v706_v12 = vunpack.c.l.bf16 %v558_v7  ;;  %v707_v13 = vunpack.c.h.bf16 %v558_v7 }
  0xc1   : > { %v839_v16 = vunpack.c.l.bf16 %v481_v9  ;;  %v840_v17 = vunpack.c.h.bf16 %v481_v9 }
  0xc2   : > { %v708_v18 = vadd.f32 %v706_v12, %v700_v10  ;;  %v709_v19 = vadd.f32 %v707_v13, %v701_v11 }
  0xc3   : > { %v846_v20 = vadd.f32 %v844_v14, %v839_v16  ;;  %v847_v21 = vadd.f32 %v845_v15, %v840_v17 }
  0xc4   : > { %v534_v23 = vpop.f32.mrf.mxu2  ;;  %v710_v24 = vadd.f32 %v708_v18, %v590_v59  ;;  %v711_v25 = vadd.f32 %v709_v19, %v591_v58 }
  0xc5   : > { %v553_v26 = vpop.f32.mrf.mxu3  ;;  %v650_v27 = vpop.f32.mrf.mxu0  ;;  %v1678_v28 = vadd.f32 %v846_v20, %v590_v59  ;;  %v1680_v29 = vadd.f32 %v847_v21, %v591_v58 }
  0xc6   : > { %v559_v30 = vpack.c.bf16 %v553_v26, %v534_v23  ;;  %v663_v31 = vpop.f32.mrf.mxu1 }
  0xc8   : > { %v585_v34 = vunpack.c.l.bf16 %v559_v30  ;;  %v586_v35 = vunpack.c.h.bf16 %v559_v30 }
  0xca   : > { %v588_v36 = vadd.f32 %v586_v35, %v580_v33  ;;  %v587_v37 = vadd.f32 %v585_v34, %v579_v32 }
  0xcc   : > { %v595_v38 = vadd.f32 %v591_v58, %v588_v36  ;;  %v594_v39 = vadd.f32 %v590_v59, %v587_v37 }
  0xcd   : > { %v652_v40 = vpop.f32.mrf.mxu0 }
  0xce   : > { %v668_v41 = vadd.f32 %v663_v31, %v595_v38  ;;  %v667_v42 = vadd.f32 %v650_v27, %v594_v39  ;;  %v665_v43 = vpop.f32.mrf.mxu1 }
  0xd0   : > { %1290 = vtanh.f32 %v668_v41 }
  0xd1   : > { %1292 = vtanh.f32 %v667_v42 }
  0xd6   : > { %v1291_v44 = vpop.eup %1290 }
  0xd7   : > { %681 = vrot.lane.b32.xlu0 %v1291_v44, %s1493_s21  ;;  %v1293_v46 = vpop.eup %1292  ;;  %v672_v56 = vadd.f32 1.0, %v1291_v44 }
  0xd8   : > { %v671_v47 = vadd.f32 1.0, %v1293_v46 }
  0xd9   : > { %v674_v57 = vmul.f32 0.5, %v672_v56 }
  0xda   : > { %v673_v48 = vmul.f32 0.5, %v671_v47 }
  0xdf   : > { %676 = vrot.lane.b32.xlu0 %v574_v45, %s1493_s21 }
 0x149   : > { %v682_v49 = vpop.permute.xlu0 %681 }
 0x14a   : > { %v684_v50 = vmul.f32 %v682_v49, %v673_v48 }
 0x14c   : > { %686 = vrot.lane.b32.xlu1 %v684_v50, %s1493_s21 }
 0x151   : > { %v677_v51 = vpop.permute.xlu0 %676 }
 0x152   : > { %v679_v52 = vmul.f32 %v677_v51, %v673_v48 }
 0x1be   : > { %v687_v53 = vpop.permute.xlu1 %686 }
 0x1bf   : > { %v689_v54 = vadd.f32 %v687_v53, %v679_v52 }
 0x1c1   : > { %1294 = vtanh.f32 %v689_v54 }
 0x1c7   : > { %v1295_v55 = vpop.eup %1294 }
 0x1c8   : > { %692 = vrot.lane.b32.xlu1 %v1295_v55, %s1493_s21 }
 0x23a   : > { %v693_v58 = vpop.permute.xlu1 %692 }
 0x23b   : > { %v695_v59 = vmul.f32 %v693_v58, %v674_v57 }
 0x23d   : > { %v712_v60 = vpack.c.bf16 %v695_v59, %v695_v59 }
 0x23f   : > { %1181 = vmatmul.msk.bf16.vlgmr.msrb.gmra.mxu2 %vm637_vm2, %v712_v60  ;;  %1182 = vmatmul.msk.bf16.vlgmr.msrb.gmra.mxu3 %vm637_vm2, %v712_v60 }
 0x2c2   : > { %v725_v61 = vpop.f32.mrf.mxu2  ;;  %v738_v62 = vpop.f32.mrf.mxu3 }
 0x2c3   : > { %v742_v63 = vadd.f32 %v725_v61, %v710_v24  ;;  %v743_v0 = vadd.f32 %v738_v62, %v711_v25 }
 0x2c5   : > { %1296 = vtanh.f32 %v743_v0 }
 0x2c6   : > { %1298 = vtanh.f32 %v742_v63 }
 0x2ca   : > { %v727_v1 = vpop.f32.mrf.mxu2  ;;  %v740_v2 = vpop.f32.mrf.mxu3 }
 0x2cb   : > { %v1297_v3 = vpop.eup %1296 }
 0x2cc   : > { %752 = vrot.lane.b32.xlu2 %v1297_v3, %s1493_s21  ;;  %v1299_v4 = vpop.eup %1298  ;;  %v747_v15 = vadd.f32 1.0, %v1297_v3 }
 0x2cd   : > { %v746_v7 = vadd.f32 1.0, %v1299_v4 }
 0x2ce   : > { %v749_v16 = vmul.f32 0.5, %v747_v15 }
 0x2cf   : > { %v748_v8 = vmul.f32 0.5, %v746_v7 }
 0x2d1   : > { %v750_v11 = vmul.f32 %v748_v8, %v689_v54 }
 0x326   : > { %v753_v9 = vpop.permute.xlu2 %752 }
 0x327   : > { %v755_v10 = vmul.f32 %v753_v9, %v748_v8 }
 0x329   : > { %757 = vrot.lane.b32.xlu2 %v755_v10, %s1493_s21 }
 0x383   : > { %v758_v12 = vpop.permute.xlu2 %757 }
 0x384   : > { %v760_v13 = vadd.f32 %v758_v12, %v750_v11 }
 0x386   : > { %1300 = vtanh.f32 %v760_v13 }
 0x38c   : > { %v1301_v14 = vpop.eup %1300 }
 0x38d   : > { %763 = vrot.lane.b32.xlu0 %v1301_v14, %s1493_s21 }
 0x3ff   : > { %v764_v17 = vpop.permute.xlu0 %763 }
 0x400   : > { %v766_v18 = vmul.f32 %v764_v17, %v749_v16 }
 0x402   : > { %v781_v19 = vpack.c.bf16 %v766_v18, %v766_v18 }
 0x404   : > { %1183 = vmatmul.msk.bf16.vlgmr.msra.gmra.mxu0 %vm637_vm2, %v781_v19  ;;  %1184 = vmatmul.msk.bf16.vlgmr.msra.gmra.mxu1 %vm637_vm2, %v781_v19 }
 0x481   : > { %v794_v20 = vpop.f32.mrf.mxu0  ;;  %v807_v21 = vpop.f32.mrf.mxu1 }
 0x482   : > { %v811_v22 = vadd.f32 %v794_v20, %v1674_v5  ;;  %v812_v23 = vadd.f32 %v807_v21, %v1676_v6 }
 0x484   : > { %1302 = vtanh.f32 %v812_v23 }
 0x485   : > { %1304 = vtanh.f32 %v811_v22 }
 0x489   : > { %v796_v24 = vpop.f32.mrf.mxu0  ;;  %v809_v25 = vpop.f32.mrf.mxu1 }
 0x48a   : > { %v1303_v26 = vpop.eup %1302 }
 0x48b   : > { %821 = vrot.lane.b32.xlu1 %v1303_v26, %s1493_s21  ;;  %v1305_v27 = vpop.eup %1304  ;;  %v816_v6 = vadd.f32 1.0, %v1303_v26 }
 0x48c   : > { %v815_v30 = vadd.f32 1.0, %v1305_v27 }
 0x48d   : > { %v818_v37 = vmul.f32 0.5, %v816_v6 }
 0x48e   : > { %v817_v31 = vmul.f32 0.5, %v815_v30 }
 0x490   : > { %v819_v34 = vmul.f32 %v817_v31, %v760_v13 }
 0x4fd   : > { %v822_v32 = vpop.permute.xlu1 %821 }
 0x4fe   : > { %v824_v33 = vmul.f32 %v822_v32, %v817_v31 }
 0x500   : > { %826 = vrot.lane.b32.xlu2 %v824_v33, %s1493_s21 }
 0x55a   : > { %v827_v35 = vpop.permute.xlu2 %826 }
 0x55b   : > { %v829_v36 = vadd.f32 %v827_v35, %v819_v34 }
 0x55d   : > { %1306 = vtanh.f32 %v829_v36 }
 0x563   : > { %v1307_v5 = vpop.eup %1306 }
 0x564   : > { %832 = vrot.lane.b32.xlu0 %v1307_v5, %s1493_s21 }
 0x5d6   : > { %v833_v38 = vpop.permute.xlu0 %832 }
 0x5d7   : > { %v835_v39 = vmul.f32 %v833_v38, %v818_v37 }
 0x5d9   : > { %v850_v40 = vpack.c.bf16 %v835_v39, %v835_v39 }
 0x5db   : > { %1185 = vmatmul.msk.bf16.vlgmr.msra.gmra.mxu2 %vm637_vm2, %v850_v40  ;;  %1186 = vmatmul.msk.bf16.vlgmr.msra.gmra.mxu3 %vm637_vm2, %v850_v40 }
 0x65e   : > { %v863_v41 = vpop.f32.mrf.mxu2  ;;  %v876_v42 = vpop.f32.mrf.mxu3 }
 0x65f   : > { %v880_v43 = vadd.f32 %v863_v41, %v1678_v28  ;;  %v881_v44 = vadd.f32 %v876_v42, %v1680_v29 }
 0x661   : > { %1308 = vtanh.f32 %v881_v44 }
 0x662   : > { %1310 = vtanh.f32 %v880_v43 }
 0x666   : > { %v865_v45 = vpop.f32.mrf.mxu2  ;;  %v878_v46 = vpop.f32.mrf.mxu3 }
 0x667   : > { %v1309_v47 = vpop.eup %1308 }
 0x668   : > { %890 = vrot.lane.b32.xlu1 %v1309_v47, %s1493_s21  ;;  %v1311_v48 = vpop.eup %1310  ;;  %v885_v56 = vadd.f32 1.0, %v1309_v47 }
 0x669   : > { %v884_v49 = vadd.f32 1.0, %v1311_v48 }
 0x66a   : > { %v887_v57 = vmul.f32 0.5, %v885_v56 }
 0x66b   : > { %v886_v50 = vmul.f32 0.5, %v884_v49 }
 0x66d   : > { %v888_v53 = vmul.f32 %v886_v50, %v829_v36 }
 0x6da   : > { %v891_v51 = vpop.permute.xlu1 %890 }
 0x6db   : > { %v893_v52 = vmul.f32 %v891_v51, %v886_v50 }
 0x6dd   : > { %895 = vrot.lane.b32.xlu2 %v893_v52, %s1493_s21 }
 0x737   : > { %v896_v54 = vpop.permute.xlu2 %895 }
 0x738   : > { %v898_v55 = vadd.f32 %v896_v54, %v888_v53 }
 0x73a   : > { %1312 = vtanh.f32 %v898_v55  ;;  %907 = vrot.lane.b32.xlu1 %v898_v55, %s1493_s21 }
 0x740   : > { %v1313_v28 = vpop.eup %1312 }
 0x741   : > { %901 = vrot.lane.b32.xlu0 %v1313_v28, %s1493_s21 }
 0x7ac   : > { %v908_v29 = vpop.permute.xlu1 %907 }
 0x7ad   : > { %910 = vst.msk [vmem:[#allocation3] sm:$0xff] %vm637_vm2, %v908_v29 }
 0x7b2   : > { %914 = sbr.rel (%p1187_p9) target bundleno = 2125 (0x84d), region = 72 }
 0x7b3   : > { %v902_v58 = vpop.permute.xlu0 %901 }
 0x7b4   : > { %v904_v59 = vmul.f32 %v902_v58, %v887_v57 }
 0x7b6   : > { %905 = vst.msk [vmem:[#allocation2] sm:$0xff] %vm637_vm2, %v904_v59 }
 0x7b7   : > { %v1230_v60 = vld [vmem:[#allocation11 + $0x18] sm:$0xff]  ;;  %v1229_v61 = vld [vmem:[#allocation11 + $0x10] sm:$0xff]  ;;  %v1228_v62 = vld [vmem:[#allocation11 + $0x8] sm:$0xff]  ;;  %v915_v0 = vpack.c.bf16 %v904_v59, %v904_v59  ;;  %v969_v1 = vsel %vm637_vm2, %v908_v29, 0.0 }
 0x7b8   : > { %959 = vmatpush.bf16.msra.mxu0 %v1230_v60  ;;  %v1227_v63 = vld [vmem:[#allocation11] sm:$0xff]  ;;  %970 = vst [vmem:[#allocation13] sm:$0xff] %v969_v1  ;;  %v1314_v2 = vld [vmem:[%s1743_s7] ss:$0 sm:$0xff] }
 0x7bc   : > { %960 = vmatpush.bf16.msra.mxu0 %v1229_v61 }
 0x7c0   : > { %961 = vmatpush.bf16.msra.mxu0 %v1228_v62 }
 0x7c4   : > { %962 = vmatpush.bf16.msra.mxu0 %v1227_v63 }
 0x7c7   : > { %1204 = vmatmul.msk.bf16.vlgmr.msra.gmra.mxu0 %vm637_vm2, %v915_v0 }
 0x844   : > { %v964_v3 = vpop.f32.mrf.mxu0 }
 0x845   : > { %v965_v4 = vadd.f32 %v1314_v2, %v964_v3 }
 0x847   : > { %968 = vst [vmem:[#allocation12] sm:$0xff] %v965_v4 }
 0x84c   : > { %v966_v7 = vpop.f32.mrf.mxu0 }
 0x84d PF: > { %p1267_p10 = scmp.eq.s32.totalorder %s1552_s10, 1  ;;  %s1494_s25 = smov [#allocation12]  }
 0x84e   : > { %s977_s26 = sshll.u32 %s1494_s25, 4  ;;  %s979_s29 = sshll.u32 %s1744_s8, 4  ;;  %s978_s26 = int_to_ptr.vmem [resolvable:$true] %s977_s26  ;;  %s980_s29 = int_to_ptr.hbm [resolvable:$true] %s979_s29 }
 0x84f   : > { %1244 = dma.vmem_to_hbm [thread:$0]  (%p1267_p10), %s978_s26, 128, %s980_s29, [#allocation8]  }
 0x850   : > { %s991_s13 = sshll.u32 %s1745_s9, 4  ;;  %s1495_s15 = smov [#allocation13]   ;;  %s992_s13 = int_to_ptr.hbm [resolvable:$true] %s991_s13 }
 0x851   : > { %s989_s16 = sshll.u32 %s1495_s15, 4  ;;  %s990_s16 = int_to_ptr.vmem [resolvable:$true] %s989_s16 }
 0x852   : > { %1246 = dma.vmem_to_hbm [thread:$0]  (%p1267_p10), %s990_s16, 128, %s992_s13, [#allocation14]  }
 0x853   : > { %1474 = dma.done.wait (%p1267_p10), [#allocation8], 128  }
 0x854   : > { %1476 = vsyncadd (%p1267_p10), [#allocation8], 4294967168 }
 0x855   : > { %1478 = dma.done.wait (%p1267_p10), [#allocation14], 128  }
 0x856   : > { %1480 = vsyncadd (%p1267_p10), [#allocation14], 4294967168 }
 0x857 PF: > { %s24_s30 = sadd.s32 1, %s1483_s30  }
 0x858   : > { %p21_p11 = scmp.ge.s32.totalorder %s24_s30, 4  }
 0x85a   :  { %23 = sbr.rel (!%p21_p11) target bundleno = 4 (0x4), region = 119 }
 0x85f   :  { %1010 = vsyncpa [#allocation7], 1 }
 0x860   :  { %1012 = vsyncpa [#allocation7 + $0x1], 1 }
 0x861   :  { %1013 = vsyncpa [#allocation10], 1 }
 0x862   :  { %1014 = vsyncpa [#allocation8], 1 }
 0x863   :  { %1016 = vsyncpa [#allocation8 + $0x1], 1 }
 0x864   :  { %1017 = vsyncpa [#allocation14], 1 }

</bundles_post_ra>
